<compile_context>
chip_gen: v6e
topology: v6e:2x2x1
jax: 0.10.0
libtpu: 0.0.40
codegen_flags: <defaults>
</compile_context>

<pallas_src>
import functools
import math

import jax
import jax.numpy as jnp
from jax.experimental import pallas as pl
from jax.experimental.pallas import tpu as pltpu


VMEM_LIMIT_BYTES = 32 * 1024 * 1024   # safe on v5e/v6e/v7x (>= default scoped)
ROW_BLOCK_TARGET = 256                # 256-row tiles keep double-buffered
                                      # blocks inside v7x's 64 MiB VMEM too


def _row_block(m, target=ROW_BLOCK_TARGET):
    """Row-tile size <= target; prefer an exact divisor that is a multiple of 8."""
    if m <= target:
        return m
    for cand in range(target, 7, -8):
        if m % cand == 0:
            return cand
    return target  # ragged final block handled by Pallas edge masking


def _compiler_params(n_parallel_axes):
    return pltpu.CompilerParams(
        dimension_semantics=("parallel",) * n_parallel_axes,
        vmem_limit_bytes=VMEM_LIMIT_BYTES)


# ----------------------------- Pallas kernels -----------------------------

def _linear_kernel(x_ref, w_ref, b_ref, o_ref):
    # x: (bm, K), w: (K, N), b: (1, N); bf16 MXU inputs, f32 accumulate.
    x = x_ref[...].astype(jnp.bfloat16)
    w = w_ref[...].astype(jnp.bfloat16)
    y = jnp.dot(x, w, preferred_element_type=jnp.float32)
    o_ref[...] = (y + b_ref[...]).astype(o_ref.dtype)


def _ffn_kernel(x_ref, w1_ref, b1_ref, w2_ref, b2_ref, o_ref):
    # relu(x @ w1 + b1) @ w2 + b2, fused in one kernel per row tile.
    x = x_ref[...].astype(jnp.bfloat16)
    h = jnp.dot(x, w1_ref[...].astype(jnp.bfloat16),
                preferred_element_type=jnp.float32)
    h = jnp.maximum(h + b1_ref[...], 0.0)
    y = jnp.dot(h.astype(jnp.bfloat16), w2_ref[...].astype(jnp.bfloat16),
                preferred_element_type=jnp.float32)
    o_ref[...] = (y + b2_ref[...]).astype(o_ref.dtype)


def _ln_math(x, g, b, eps):
    # Matches the torch module: a * (x - mean) / (std + eps) + b with the
    # unbiased (divide by D-1) standard deviation and eps added to std.
    d = x.shape[-1]
    mu = jnp.mean(x, axis=-1, keepdims=True)
    xc = x - mu
    std = jnp.sqrt(jnp.sum(xc * xc, axis=-1, keepdims=True) / (d - 1))
    return g * xc / (std + eps) + b


def _ln_kernel(x_ref, g_ref, b_ref, o_ref, *, eps):
    x = x_ref[...].astype(jnp.float32)
    o_ref[...] = _ln_math(x, g_ref[...], b_ref[...], eps).astype(o_ref.dtype)


def _add_ln_kernel(x_ref, r_ref, g_ref, b_ref, o_ref, *, eps):
    # Residual add fused into the layernorm kernel.
    x = x_ref[...].astype(jnp.float32) + r_ref[...].astype(jnp.float32)
    o_ref[...] = _ln_math(x, g_ref[...], b_ref[...], eps).astype(o_ref.dtype)


def _mha_kernel(qkv_ref, m_ref, o_ref, *, n_heads, scale):
    # qkv: (1, S, 3D) packed projections; m: (1, 1, S) additive key mask
    # broadcast over query rows; output: (1, S, D) lane-dense block.
    # TODO(synk): for long sequences, tile Sk with an online-softmax (flash)
    # accumulator instead of holding the full (S, S) score matrix per head.
    qkv = qkv_ref[0]                       # (S, 3D)
    d = qkv.shape[-1] // 3
    dh = d // n_heads
    m = m_ref[0].astype(jnp.float32)       # (1, S)
    outs = []
    for h in range(n_heads):               # static unroll over heads
        lo = h * dh
        qh = qkv[:, lo:lo + dh].astype(jnp.bfloat16)
        kh = qkv[:, d + lo:d + lo + dh].astype(jnp.bfloat16)
        vh = qkv[:, 2 * d + lo:2 * d + lo + dh].astype(jnp.bfloat16)
        s = jax.lax.dot_general(qh, kh, (((1,), (1,)), ((), ())),
                                preferred_element_type=jnp.float32)
        s = s * scale + m
        s = s - jnp.max(s, axis=-1, keepdims=True)
        p = jnp.exp(s)
        inv = pl.reciprocal(jnp.sum(p, axis=-1, keepdims=True), approx=True)
        p = p * inv
        outs.append(jnp.dot(p.astype(jnp.bfloat16), vh,
                            preferred_element_type=jnp.float32))
    o_ref[0] = jnp.concatenate(outs, axis=-1).astype(o_ref.dtype)


# --------------------------- pallas_call wrappers ---------------------------

def linear(x2d, w, b):
    M, K = x2d.shape
    N = w.shape[1]
    bm = _row_block(M)
    return pl.pallas_call(
        _linear_kernel,
        out_shape=jax.ShapeDtypeStruct((M, N), x2d.dtype),
        grid=(pl.cdiv(M, bm),),
        in_specs=[pl.BlockSpec((bm, K), lambda i: (i, 0)),
                  pl.BlockSpec((K, N), lambda i: (0, 0)),
                  pl.BlockSpec((1, N), lambda i: (0, 0))],
        out_specs=pl.BlockSpec((bm, N), lambda i: (i, 0)),
        compiler_params=_compiler_params(1),
    )(x2d, w, b.reshape(1, N))


def layer_norm(x, g, b, eps=1e-6):
    B, S, D = x.shape
    M = B * S
    bm = _row_block(M)
    y = pl.pallas_call(
        functools.partial(_ln_kernel, eps=eps),
        out_shape=jax.ShapeDtypeStruct((M, D), x.dtype),
        grid=(pl.cdiv(M, bm),),
        in_specs=[pl.BlockSpec((bm, D), lambda i: (i, 0)),
                  pl.BlockSpec((1, D), lambda i: (0, 0)),
                  pl.BlockSpec((1, D), lambda i: (0, 0))],
        out_specs=pl.BlockSpec((bm, D), lambda i: (i, 0)),
        compiler_params=_compiler_params(1),
    )(x.reshape(M, D), g.reshape(1, D), b.reshape(1, D))
    return y.reshape(B, S, D)


def add_layer_norm(x, res, g, b, eps=1e-6):
    """LayerNorm(x + res) with the residual add fused into the kernel."""
    B, S, D = x.shape
    M = B * S
    bm = _row_block(M)
    y = pl.pallas_call(
        functools.partial(_add_ln_kernel, eps=eps),
        out_shape=jax.ShapeDtypeStruct((M, D), x.dtype),
        grid=(pl.cdiv(M, bm),),
        in_specs=[pl.BlockSpec((bm, D), lambda i: (i, 0)),
                  pl.BlockSpec((bm, D), lambda i: (i, 0)),
                  pl.BlockSpec((1, D), lambda i: (0, 0)),
                  pl.BlockSpec((1, D), lambda i: (0, 0))],
        out_specs=pl.BlockSpec((bm, D), lambda i: (i, 0)),
        compiler_params=_compiler_params(1),
    )(x.reshape(M, D), res.reshape(M, D), g.reshape(1, D), b.reshape(1, D))
    return y.reshape(B, S, D)


def feed_forward(x, p):
    B, S, D = x.shape
    M = B * S
    d_ff = p["w1"].shape[1]
    bm = _row_block(M)
    y = pl.pallas_call(
        _ffn_kernel,
        out_shape=jax.ShapeDtypeStruct((M, D), x.dtype),
        grid=(pl.cdiv(M, bm),),
        in_specs=[pl.BlockSpec((bm, D), lambda i: (i, 0)),
                  pl.BlockSpec((D, d_ff), lambda i: (0, 0)),
                  pl.BlockSpec((1, d_ff), lambda i: (0, 0)),
                  pl.BlockSpec((d_ff, D), lambda i: (0, 0)),
                  pl.BlockSpec((1, D), lambda i: (0, 0))],
        out_specs=pl.BlockSpec((bm, D), lambda i: (i, 0)),
        compiler_params=_compiler_params(1),
    )(x.reshape(M, D), p["w1"], p["b1"].reshape(1, d_ff),
      p["w2"], p["b2"].reshape(1, D))
    return y.reshape(B, S, D)


def _attention_core(qkv, mask_add, n_heads):
    B, S, D3 = qkv.shape
    D = D3 // 3
    dh = D // n_heads
    return pl.pallas_call(
        functools.partial(_mha_kernel, n_heads=n_heads,
                          scale=1.0 / math.sqrt(dh)),
        out_shape=jax.ShapeDtypeStruct((B, S, D), qkv.dtype),
        grid=(B,),
        in_specs=[pl.BlockSpec((1, S, D3), lambda b: (b, 0, 0)),
                  pl.BlockSpec((1, 1, S), lambda b: (b, 0, 0))],
        out_specs=pl.BlockSpec((1, S, D), lambda b: (b, 0, 0)),
        compiler_params=_compiler_params(1),
    )(qkv, mask_add)


def multi_head_attention(x, mask_add, p, n_heads):
    B, S, D = x.shape
    # Fused Q/K/V projection: one matmul against concatenated (D, 3D) weight;
    # the packed result goes straight into the attention kernel (no slices,
    # no head transposes in HBM).
    qkv = linear(x.reshape(B * S, D), p["wqkv"], p["bqkv"]).reshape(B, S, 3 * D)
    o = _attention_core(qkv, mask_add, n_heads)
    return linear(o.reshape(B * S, D), p["wo"], p["bo"]).reshape(B, S, D)


# ------------------------------- model glue -------------------------------

def encoder_layer(x, mask_add, p, n_heads):
    # TODO(synk): EncoderLayer internals are not in the spec; we use the
    # standard post-norm residual layer (self-attn -> add&norm -> FFN ->
    # add&norm), dropout omitted (eval mode).
    a = multi_head_attention(x, mask_add, p["self_attn"], n_heads)
    x = add_layer_norm(x, a, p["ln1_g"], p["ln1_b"])
    f = feed_forward(x, p["ffn"])
    x = add_layer_norm(x, f, p["ln2_g"], p["ln2_b"])
    return x


def encoder_forward(params, x, x_mask, *, n_heads):
    # Additive mask kept at (B, 1, S); broadcast over query rows and heads
    # inside the attention kernel (no jnp.repeat, no (B, S, S) materialization).
    mask_add = (1.0 - x_mask.astype(jnp.float32))[:, None, :] * -1e9
    for lp in params["layers"]:
        x = encoder_layer(x, mask_add, lp, n_heads)
    return layer_norm(x, params["norm_g"], params["norm_b"])


# ----------------------------- parameter init -----------------------------

def _dense(key, din, dout):
    w = jax.random.normal(key, (din, dout), jnp.float32) / math.sqrt(din)
    b = jnp.zeros((dout,), jnp.float32)
    return w, b


def _attn_params(key, d_model):
    k1, k2 = jax.random.split(key)
    wqkv, bqkv = _dense(k1, d_model, 3 * d_model)
    wo, bo = _dense(k2, d_model, d_model)
    return dict(wqkv=wqkv, bqkv=bqkv, wo=wo, bo=bo)


def _ffn_params(key, d_model, d_ff):
    k1, k2 = jax.random.split(key)
    w1, b1 = _dense(k1, d_model, d_ff)
    w2, b2 = _dense(k2, d_ff, d_model)
    return dict(w1=w1, b1=b1, w2=w2, b2=b2)


def init_params(key, d_model, d_ff, n_layers):
    keys = jax.random.split(key, n_layers)
    layers = []
    for l in range(n_layers):
        k = jax.random.split(keys[l], 2)
        layers.append(dict(
            self_attn=_attn_params(k[0], d_model),
            ffn=_ffn_params(k[1], d_model, d_ff),
            # Module's LayerNorm initializes both a and b to ones.
            ln1_g=jnp.ones((d_model,)), ln1_b=jnp.ones((d_model,)),
            ln2_g=jnp.ones((d_model,)), ln2_b=jnp.ones((d_model,)),
        ))
    return dict(layers=layers,
                norm_g=jnp.ones((d_model,)), norm_b=jnp.ones((d_model,)))


# --------------------------------- driver ---------------------------------

if __name__ == "__main__":
    B, S = 2, 8
    D_MODEL, D_FF, N_HEADS, N_LAYERS = 32, 64, 4, 2

    key = jax.random.PRNGKey(0)
    k_param, k_x = jax.random.split(key)

    params = init_params(k_param, D_MODEL, D_FF, N_LAYERS)
    x = jax.random.normal(k_x, (B, S, D_MODEL), jnp.float32)

    # padding mask (1 = keep); mask out last 2 positions of batch 1
    x_mask = jnp.ones((B, S), jnp.int32)
    x_mask = x_mask.at[1, -2:].set(0)

    fwd = jax.jit(functools.partial(encoder_forward, n_heads=N_HEADS))
    out = fwd(params, x, x_mask)
    out = jax.block_until_ready(out)

    assert out.shape == (B, S, D_MODEL)
    assert bool(jnp.all(jnp.isfinite(out)))
    print("KERNEL_OK")
</pallas_src>

<mosaic_0001>
module attributes {stable_mosaic.version = 11 : i64} {
  func.func @_linear_kernel(%arg0: i32, %arg1: memref<16x32xf32, #tpu.memory_space<vmem>>, %arg2: memref<32x96xf32, #tpu.memory_space<vmem>>, %arg3: memref<1x96xf32, #tpu.memory_space<vmem>>, %arg4: memref<16x96xf32, #tpu.memory_space<vmem>>) attributes {dimension_semantics = [#tpu.dimension_semantics<parallel>], iteration_bounds = array<i64: 1>, scalar_prefetch = 0 : i64, scratch_operands = 0 : i64, tpu.core_type = #tpu.core_type<tc>, window_params = [{transform_indices = @transform_0, window_bounds = array<i64: 16, 32>}, {pipeline_mode = #tpu.pipeline_mode<synchronous>, transform_indices = @transform_1, window_bounds = array<i64: 32, 96>}, {pipeline_mode = #tpu.pipeline_mode<synchronous>, transform_indices = @transform_2, window_bounds = array<i64: 1, 96>}, {transform_indices = @transform_3, window_bounds = array<i64: 16, 96>}]} {
    %c0 = arith.constant 0 : index
    %c0_0 = arith.constant 0 : index
    %0 = vector.load %arg1[%c0, %c0_0] : memref<16x32xf32, #tpu.memory_space<vmem>>, vector<16x32xf32>
    %1 = arith.truncf %0 : vector<16x32xf32> to vector<16x32xbf16>
    %c0_1 = arith.constant 0 : index
    %c0_2 = arith.constant 0 : index
    %2 = vector.load %arg2[%c0_1, %c0_2] : memref<32x96xf32, #tpu.memory_space<vmem>>, vector<32x96xf32>
    %3 = arith.truncf %2 : vector<32x96xf32> to vector<32x96xbf16>
    %cst = arith.constant dense<0.000000e+00> : vector<16x96xf32>
    %4 = tpu.matmul %1, %3, %cst {dimension_numbers = #tpu.dot_dimension_numbers<[1], [0], [0], [1], [0, 0, 1, 1], [], []>} : vector<16x32xbf16>, vector<32x96xbf16>, vector<16x96xf32> -> vector<16x96xf32>
    %c0_3 = arith.constant 0 : index
    %c0_4 = arith.constant 0 : index
    %5 = vector.load %arg3[%c0_3, %c0_4] : memref<1x96xf32, #tpu.memory_space<vmem>>, vector<1x96xf32>
    %6 = vector.broadcast %5 : vector<1x96xf32> to vector<16x96xf32>
    %7 = arith.addf %4, %6 : vector<16x96xf32>
    %c0_5 = arith.constant 0 : index
    %c0_6 = arith.constant 0 : index
    %8 = vector.load %arg4[%c0_5, %c0_6] : memref<16x96xf32, #tpu.memory_space<vmem>>, vector<16x96xf32>
    tpu.vector_store %arg4[%c0_5, %c0_6], %7 {strides = array<i32>} : memref<16x96xf32, #tpu.memory_space<vmem>>, vector<16x96xf32>,
    return
  }
  func.func @transform_0(%arg0: i32) -> (i32, i32) {
    %c0_i32 = arith.constant 0 : i32
    %c0_i32_0 = arith.constant 0 : i32
    return %arg0, %c0_i32 : i32, i32
  }
  func.func @transform_1(%arg0: i32) -> (i32, i32) {
    %c0_i32 = arith.constant 0 : i32
    %c0_i32_0 = arith.constant 0 : i32
    %c0_i32_1 = arith.constant 0 : i32
    return %c0_i32, %c0_i32_0 : i32, i32
  }
  func.func @transform_2(%arg0: i32) -> (i32, i32) {
    %c0_i32 = arith.constant 0 : i32
    %c0_i32_0 = arith.constant 0 : i32
    %c0_i32_1 = arith.constant 0 : i32
    return %c0_i32, %c0_i32_0 : i32, i32
  }
  func.func @transform_3(%arg0: i32) -> (i32, i32) {
    %c0_i32 = arith.constant 0 : i32
    %c0_i32_0 = arith.constant 0 : i32
    return %arg0, %c0_i32 : i32, i32
  }
}

module attributes {stable_mosaic.version = 11 : i64} {
  func.func @_mha_kernel(%arg0: i32, %arg1: memref<1x8x96xf32, #tpu.memory_space<vmem>>, %arg2: memref<1x1x8xf32, #tpu.memory_space<vmem>>, %arg3: memref<1x8x32xf32, #tpu.memory_space<vmem>>) attributes {dimension_semantics = [#tpu.dimension_semantics<parallel>], iteration_bounds = array<i64: 2>, scalar_prefetch = 0 : i64, scratch_operands = 0 : i64, tpu.core_type = #tpu.core_type<tc>, window_params = [{transform_indices = @transform_0, window_bounds = array<i64: 1, 8, 96>}, {transform_indices = @transform_1, window_bounds = array<i64: 1, 1, 8>}, {transform_indices = @transform_2, window_bounds = array<i64: 1, 8, 32>}]} {
    %c0 = arith.constant 0 : index
    %c0_0 = arith.constant 0 : index
    %c0_1 = arith.constant 0 : index
    %0 = vector.load %arg1[%c0, %c0_0, %c0_1] : memref<1x8x96xf32, #tpu.memory_space<vmem>>, vector<1x8x96xf32>
    %1 = vector.shape_cast %0 : vector<1x8x96xf32> to vector<8x96xf32>
    %c0_2 = arith.constant 0 : index
    %c0_3 = arith.constant 0 : index
    %c0_4 = arith.constant 0 : index
    %2 = vector.load %arg2[%c0_2, %c0_3, %c0_4] : memref<1x1x8xf32, #tpu.memory_space<vmem>>, vector<1x1x8xf32>
    %3 = vector.shape_cast %2 : vector<1x1x8xf32> to vector<1x8xf32>
    %4 = vector.extract_strided_slice %1 {offsets = [0, 0], sizes = [8, 8], strides = [1, 1]} : vector<8x96xf32> to vector<8x8xf32>
    %5 = arith.truncf %4 : vector<8x8xf32> to vector<8x8xbf16>
    %6 = vector.extract_strided_slice %1 {offsets = [0, 32], sizes = [8, 8], strides = [1, 1]} : vector<8x96xf32> to vector<8x8xf32>
    %7 = arith.truncf %6 : vector<8x8xf32> to vector<8x8xbf16>
    %8 = vector.extract_strided_slice %1 {offsets = [0, 64], sizes = [8, 8], strides = [1, 1]} : vector<8x96xf32> to vector<8x8xf32>
    %9 = arith.truncf %8 : vector<8x8xf32> to vector<8x8xbf16>
    %cst = arith.constant dense<0.000000e+00> : vector<8x8xf32>
    %10 = tpu.matmul %5, %7, %cst {dimension_numbers = #tpu.dot_dimension_numbers<[1], [1], [0], [0], [0, 0, 1, 0], [], []>} : vector<8x8xbf16>, vector<8x8xbf16>, vector<8x8xf32> -> vector<8x8xf32>
    %cst_5 = arith.constant 0.353553385 : f32
    %11 = vector.broadcast %cst_5 : f32 to vector<8x8xf32>
    %12 = arith.mulf %10, %11 : vector<8x8xf32>
    %13 = vector.broadcast %3 : vector<1x8xf32> to vector<8x8xf32>
    %14 = arith.addf %12, %13 : vector<8x8xf32>
    %cst_6 = arith.constant dense<0xFF800000> : vector<8xf32>
    %15 = vector.multi_reduction <maximumf>, %14, %cst_6 [1] : vector<8x8xf32> to vector<8xf32>
    %16 = vector.shape_cast %15 : vector<8xf32> to vector<8x1xf32>
    %17 = vector.broadcast %16 : vector<8x1xf32> to vector<8x8xf32>
    %18 = arith.subf %14, %17 : vector<8x8xf32>
    %19 = math.exp %18 : vector<8x8xf32>
    %cst_7 = arith.constant dense<0.000000e+00> : vector<8xf32>
    %20 = vector.multi_reduction <add>, %19, %cst_7 [1] : vector<8x8xf32> to vector<8xf32>
    %21 = vector.shape_cast %20 : vector<8xf32> to vector<8x1xf32>
    %22 = tpu.reciprocal %21 {approx = true} : vector<8x1xf32> -> vector<8x1xf32>
    %23 = vector.broadcast %22 : vector<8x1xf32> to vector<8x8xf32>
    %24 = arith.mulf %19, %23 : vector<8x8xf32>
    %25 = arith.truncf %24 : vector<8x8xf32> to vector<8x8xbf16>
    %cst_8 = arith.constant dense<0.000000e+00> : vector<8x8xf32>
    %26 = tpu.matmul %25, %9, %cst_8 {dimension_numbers = #tpu.dot_dimension_numbers<[1], [0], [0], [1], [0, 0, 1, 1], [], []>} : vector<8x8xbf16>, vector<8x8xbf16>, vector<8x8xf32> -> vector<8x8xf32>
    %27 = vector.extract_strided_slice %1 {offsets = [0, 8], sizes = [8, 8], strides = [1, 1]} : vector<8x96xf32> to vector<8x8xf32>
    %28 = arith.truncf %27 : vector<8x8xf32> to vector<8x8xbf16>
    %29 = vector.extract_strided_slice %1 {offsets = [0, 40], sizes = [8, 8], strides = [1, 1]} : vector<8x96xf32> to vector<8x8xf32>
    %30 = arith.truncf %29 : vector<8x8xf32> to vector<8x8xbf16>
    %31 = vector.extract_strided_slice %1 {offsets = [0, 72], sizes = [8, 8], strides = [1, 1]} : vector<8x96xf32> to vector<8x8xf32>
    %32 = arith.truncf %31 : vector<8x8xf32> to vector<8x8xbf16>
    %cst_9 = arith.constant dense<0.000000e+00> : vector<8x8xf32>
    %33 = tpu.matmul %28, %30, %cst_9 {dimension_numbers = #tpu.dot_dimension_numbers<[1], [1], [0], [0], [0, 0, 1, 0], [], []>} : vector<8x8xbf16>, vector<8x8xbf16>, vector<8x8xf32> -> vector<8x8xf32>
    %cst_10 = arith.constant 0.353553385 : f32
    %34 = vector.broadcast %cst_10 : f32 to vector<8x8xf32>
    %35 = arith.mulf %33, %34 : vector<8x8xf32>
    %36 = vector.broadcast %3 : vector<1x8xf32> to vector<8x8xf32>
    %37 = arith.addf %35, %36 : vector<8x8xf32>
    %cst_11 = arith.constant dense<0xFF800000> : vector<8xf32>
    %38 = vector.multi_reduction <maximumf>, %37, %cst_11 [1] : vector<8x8xf32> to vector<8xf32>
    %39 = vector.shape_cast %38 : vector<8xf32> to vector<8x1xf32>
    %40 = vector.broadcast %39 : vector<8x1xf32> to vector<8x8xf32>
    %41 = arith.subf %37, %40 : vector<8x8xf32>
    %42 = math.exp %41 : vector<8x8xf32>
    %cst_12 = arith.constant dense<0.000000e+00> : vector<8xf32>
    %43 = vector.multi_reduction <add>, %42, %cst_12 [1] : vector<8x8xf32> to vector<8xf32>
    %44 = vector.shape_cast %43 : vector<8xf32> to vector<8x1xf32>
    %45 = tpu.reciprocal %44 {approx = true} : vector<8x1xf32> -> vector<8x1xf32>
    %46 = vector.broadcast %45 : vector<8x1xf32> to vector<8x8xf32>
    %47 = arith.mulf %42, %46 : vector<8x8xf32>
    %48 = arith.truncf %47 : vector<8x8xf32> to vector<8x8xbf16>
    %cst_13 = arith.constant dense<0.000000e+00> : vector<8x8xf32>
    %49 = tpu.matmul %48, %32, %cst_13 {dimension_numbers = #tpu.dot_dimension_numbers<[1], [0], [0], [1], [0, 0, 1, 1], [], []>} : vector<8x8xbf16>, vector<8x8xbf16>, vector<8x8xf32> -> vector<8x8xf32>
    %50 = vector.extract_strided_slice %1 {offsets = [0, 16], sizes = [8, 8], strides = [1, 1]} : vector<8x96xf32> to vector<8x8xf32>
    %51 = arith.truncf %50 : vector<8x8xf32> to vector<8x8xbf16>
    %52 = vector.extract_strided_slice %1 {offsets = [0, 48], sizes = [8, 8], strides = [1, 1]} : vector<8x96xf32> to vector<8x8xf32>
    %53 = arith.truncf %52 : vector<8x8xf32> to vector<8x8xbf16>
    %54 = vector.extract_strided_slice %1 {offsets = [0, 80], sizes = [8, 8], strides = [1, 1]} : vector<8x96xf32> to vector<8x8xf32>
    %55 = arith.truncf %54 : vector<8x8xf32> to vector<8x8xbf16>
    %cst_14 = arith.constant dense<0.000000e+00> : vector<8x8xf32>
    %56 = tpu.matmul %51, %53, %cst_14 {dimension_numbers = #tpu.dot_dimension_numbers<[1], [1], [0], [0], [0, 0, 1, 0], [], []>} : vector<8x8xbf16>, vector<8x8xbf16>, vector<8x8xf32> -> vector<8x8xf32>
    %cst_15 = arith.constant 0.353553385 : f32
    %57 = vector.broadcast %cst_15 : f32 to vector<8x8xf32>
    %58 = arith.mulf %56, %57 : vector<8x8xf32>
    %59 = vector.broadcast %3 : vector<1x8xf32> to vector<8x8xf32>
    %60 = arith.addf %58, %59 : vector<8x8xf32>
    %cst_16 = arith.constant dense<0xFF800000> : vector<8xf32>
    %61 = vector.multi_reduction <maximumf>, %60, %cst_16 [1] : vector<8x8xf32> to vector<8xf32>
    %62 = vector.shape_cast %61 : vector<8xf32> to vector<8x1xf32>
    %63 = vector.broadcast %62 : vector<8x1xf32> to vector<8x8xf32>
    %64 = arith.subf %60, %63 : vector<8x8xf32>
    %65 = math.exp %64 : vector<8x8xf32>
    %cst_17 = arith.constant dense<0.000000e+00> : vector<8xf32>
    %66 = vector.multi_reduction <add>, %65, %cst_17 [1] : vector<8x8xf32> to vector<8xf32>
    %67 = vector.shape_cast %66 : vector<8xf32> to vector<8x1xf32>
    %68 = tpu.reciprocal %67 {approx = true} : vector<8x1xf32> -> vector<8x1xf32>
    %69 = vector.broadcast %68 : vector<8x1xf32> to vector<8x8xf32>
    %70 = arith.mulf %65, %69 : vector<8x8xf32>
    %71 = arith.truncf %70 : vector<8x8xf32> to vector<8x8xbf16>
    %cst_18 = arith.constant dense<0.000000e+00> : vector<8x8xf32>
    %72 = tpu.matmul %71, %55, %cst_18 {dimension_numbers = #tpu.dot_dimension_numbers<[1], [0], [0], [1], [0, 0, 1, 1], [], []>} : vector<8x8xbf16>, vector<8x8xbf16>, vector<8x8xf32> -> vector<8x8xf32>
    %73 = vector.extract_strided_slice %1 {offsets = [0, 24], sizes = [8, 8], strides = [1, 1]} : vector<8x96xf32> to vector<8x8xf32>
    %74 = arith.truncf %73 : vector<8x8xf32> to vector<8x8xbf16>
    %75 = vector.extract_strided_slice %1 {offsets = [0, 56], sizes = [8, 8], strides = [1, 1]} : vector<8x96xf32> to vector<8x8xf32>
    %76 = arith.truncf %75 : vector<8x8xf32> to vector<8x8xbf16>
    %77 = vector.extract_strided_slice %1 {offsets = [0, 88], sizes = [8, 8], strides = [1, 1]} : vector<8x96xf32> to vector<8x8xf32>
    %78 = arith.truncf %77 : vector<8x8xf32> to vector<8x8xbf16>
    %cst_19 = arith.constant dense<0.000000e+00> : vector<8x8xf32>
    %79 = tpu.matmul %74, %76, %cst_19 {dimension_numbers = #tpu.dot_dimension_numbers<[1], [1], [0], [0], [0, 0, 1, 0], [], []>} : vector<8x8xbf16>, vector<8x8xbf16>, vector<8x8xf32> -> vector<8x8xf32>
    %cst_20 = arith.constant 0.353553385 : f32
    %80 = vector.broadcast %cst_20 : f32 to vector<8x8xf32>
    %81 = arith.mulf %79, %80 : vector<8x8xf32>
    %82 = vector.broadcast %3 : vector<1x8xf32> to vector<8x8xf32>
    %83 = arith.addf %81, %82 : vector<8x8xf32>
    %cst_21 = arith.constant dense<0xFF800000> : vector<8xf32>
    %84 = vector.multi_reduction <maximumf>, %83, %cst_21 [1] : vector<8x8xf32> to vector<8xf32>
    %85 = vector.shape_cast %84 : vector<8xf32> to vector<8x1xf32>
    %86 = vector.broadcast %85 : vector<8x1xf32> to vector<8x8xf32>
    %87 = arith.subf %83, %86 : vector<8x8xf32>
    %88 = math.exp %87 : vector<8x8xf32>
    %cst_22 = arith.constant dense<0.000000e+00> : vector<8xf32>
    %89 = vector.multi_reduction <add>, %88, %cst_22 [1] : vector<8x8xf32> to vector<8xf32>
    %90 = vector.shape_cast %89 : vector<8xf32> to vector<8x1xf32>
    %91 = tpu.reciprocal %90 {approx = true} : vector<8x1xf32> -> vector<8x1xf32>
    %92 = vector.broadcast %91 : vector<8x1xf32> to vector<8x8xf32>
    %93 = arith.mulf %88, %92 : vector<8x8xf32>
    %94 = arith.truncf %93 : vector<8x8xf32> to vector<8x8xbf16>
    %cst_23 = arith.constant dense<0.000000e+00> : vector<8x8xf32>
    %95 = tpu.matmul %94, %78, %cst_23 {dimension_numbers = #tpu.dot_dimension_numbers<[1], [0], [0], [1], [0, 0, 1, 1], [], []>} : vector<8x8xbf16>, vector<8x8xbf16>, vector<8x8xf32> -> vector<8x8xf32>
    %96 = tpu.concatenate %26, %49, %72, %95 in 1 : vector<8x8xf32>, vector<8x8xf32>, vector<8x8xf32>, vector<8x8xf32> -> vector<8x32xf32>
    %c0_24 = arith.constant 0 : index
    %c0_25 = arith.constant 0 : index
    %c0_26 = arith.constant 0 : index
    %97 = vector.load %arg3[%c0_24, %c0_25, %c0_26] : memref<1x8x32xf32, #tpu.memory_space<vmem>>, vector<1x8x32xf32>
    %98 = vector.shape_cast %97 : vector<1x8x32xf32> to vector<8x32xf32>
    %99 = vector.shape_cast %96 : vector<8x32xf32> to vector<1x8x32xf32>
    tpu.vector_store %arg3[%c0_24, %c0_25, %c0_26], %99 {strides = array<i32>} : memref<1x8x32xf32, #tpu.memory_space<vmem>>, vector<1x8x32xf32>,
    return
  }
  func.func @transform_0(%arg0: i32) -> (i32, i32, i32) {
    %c0_i32 = arith.constant 0 : i32
    %c0_i32_0 = arith.constant 0 : i32
    %c0_i32_1 = arith.constant 0 : i32
    return %arg0, %c0_i32, %c0_i32_0 : i32, i32, i32
  }
  func.func @transform_1(%arg0: i32) -> (i32, i32, i32) {
    %c0_i32 = arith.constant 0 : i32
    %c0_i32_0 = arith.constant 0 : i32
    %c0_i32_1 = arith.constant 0 : i32
    return %arg0, %c0_i32, %c0_i32_0 : i32, i32, i32
  }
  func.func @transform_2(%arg0: i32) -> (i32, i32, i32) {
    %c0_i32 = arith.constant 0 : i32
    %c0_i32_0 = arith.constant 0 : i32
    %c0_i32_1 = arith.constant 0 : i32
    return %arg0, %c0_i32, %c0_i32_0 : i32, i32, i32
  }
}

module attributes {stable_mosaic.version = 11 : i64} {
  func.func @_linear_kernel(%arg0: i32, %arg1: memref<16x32xf32, #tpu.memory_space<vmem>>, %arg2: memref<32x32xf32, #tpu.memory_space<vmem>>, %arg3: memref<1x32xf32, #tpu.memory_space<vmem>>, %arg4: memref<16x32xf32, #tpu.memory_space<vmem>>) attributes {dimension_semantics = [#tpu.dimension_semantics<parallel>], iteration_bounds = array<i64: 1>, scalar_prefetch = 0 : i64, scratch_operands = 0 : i64, tpu.core_type = #tpu.core_type<tc>, window_params = [{transform_indices = @transform_0, window_bounds = array<i64: 16, 32>}, {pipeline_mode = #tpu.pipeline_mode<synchronous>, transform_indices = @transform_1, window_bounds = array<i64: 32, 32>}, {pipeline_mode = #tpu.pipeline_mode<synchronous>, transform_indices = @transform_2, window_bounds = array<i64: 1, 32>}, {transform_indices = @transform_3, window_bounds = array<i64: 16, 32>}]} {
    %c0 = arith.constant 0 : index
    %c0_0 = arith.constant 0 : index
    %0 = vector.load %arg1[%c0, %c0_0] : memref<16x32xf32, #tpu.memory_space<vmem>>, vector<16x32xf32>
    %1 = arith.truncf %0 : vector<16x32xf32> to vector<16x32xbf16>
    %c0_1 = arith.constant 0 : index
    %c0_2 = arith.constant 0 : index
    %2 = vector.load %arg2[%c0_1, %c0_2] : memref<32x32xf32, #tpu.memory_space<vmem>>, vector<32x32xf32>
    %3 = arith.truncf %2 : vector<32x32xf32> to vector<32x32xbf16>
    %cst = arith.constant dense<0.000000e+00> : vector<16x32xf32>
    %4 = tpu.matmul %1, %3, %cst {dimension_numbers = #tpu.dot_dimension_numbers<[1], [0], [0], [1], [0, 0, 1, 1], [], []>} : vector<16x32xbf16>, vector<32x32xbf16>, vector<16x32xf32> -> vector<16x32xf32>
    %c0_3 = arith.constant 0 : index
    %c0_4 = arith.constant 0 : index
    %5 = vector.load %arg3[%c0_3, %c0_4] : memref<1x32xf32, #tpu.memory_space<vmem>>, vector<1x32xf32>
    %6 = vector.broadcast %5 : vector<1x32xf32> to vector<16x32xf32>
    %7 = arith.addf %4, %6 : vector<16x32xf32>
    %c0_5 = arith.constant 0 : index
    %c0_6 = arith.constant 0 : index
    %8 = vector.load %arg4[%c0_5, %c0_6] : memref<16x32xf32, #tpu.memory_space<vmem>>, vector<16x32xf32>
    tpu.vector_store %arg4[%c0_5, %c0_6], %7 {strides = array<i32>} : memref<16x32xf32, #tpu.memory_space<vmem>>, vector<16x32xf32>,
    return
  }
  func.func @transform_0(%arg0: i32) -> (i32, i32) {
    %c0_i32 = arith.constant 0 : i32
    %c0_i32_0 = arith.constant 0 : i32
    return %arg0, %c0_i32 : i32, i32
  }
  func.func @transform_1(%arg0: i32) -> (i32, i32) {
    %c0_i32 = arith.constant 0 : i32
    %c0_i32_0 = arith.constant 0 : i32
    %c0_i32_1 = arith.constant 0 : i32
    return %c0_i32, %c0_i32_0 : i32, i32
  }
  func.func @transform_2(%arg0: i32) -> (i32, i32) {
    %c0_i32 = arith.constant 0 : i32
    %c0_i32_0 = arith.constant 0 : i32
    %c0_i32_1 = arith.constant 0 : i32
    return %c0_i32, %c0_i32_0 : i32, i32
  }
  func.func @transform_3(%arg0: i32) -> (i32, i32) {
    %c0_i32 = arith.constant 0 : i32
    %c0_i32_0 = arith.constant 0 : i32
    return %arg0, %c0_i32 : i32, i32
  }
}

module attributes {stable_mosaic.version = 11 : i64} {
  func.func @_add_ln_kernel(%arg0: i32, %arg1: memref<16x32xf32, #tpu.memory_space<vmem>>, %arg2: memref<16x32xf32, #tpu.memory_space<vmem>>, %arg3: memref<1x32xf32, #tpu.memory_space<vmem>>, %arg4: memref<1x32xf32, #tpu.memory_space<vmem>>, %arg5: memref<16x32xf32, #tpu.memory_space<vmem>>) attributes {dimension_semantics = [#tpu.dimension_semantics<parallel>], iteration_bounds = array<i64: 1>, scalar_prefetch = 0 : i64, scratch_operands = 0 : i64, tpu.core_type = #tpu.core_type<tc>, window_params = [{transform_indices = @transform_0, window_bounds = array<i64: 16, 32>}, {transform_indices = @transform_1, window_bounds = array<i64: 16, 32>}, {pipeline_mode = #tpu.pipeline_mode<synchronous>, transform_indices = @transform_2, window_bounds = array<i64: 1, 32>}, {pipeline_mode = #tpu.pipeline_mode<synchronous>, transform_indices = @transform_3, window_bounds = array<i64: 1, 32>}, {transform_indices = @transform_4, window_bounds = array<i64: 16, 32>}]} {
    %c0 = arith.constant 0 : index
    %c0_0 = arith.constant 0 : index
    %0 = vector.load %arg1[%c0, %c0_0] : memref<16x32xf32, #tpu.memory_space<vmem>>, vector<16x32xf32>
    %c0_1 = arith.constant 0 : index
    %c0_2 = arith.constant 0 : index
    %1 = vector.load %arg2[%c0_1, %c0_2] : memref<16x32xf32, #tpu.memory_space<vmem>>, vector<16x32xf32>
    %2 = arith.addf %0, %1 : vector<16x32xf32>
    %c0_3 = arith.constant 0 : index
    %c0_4 = arith.constant 0 : index
    %3 = vector.load %arg3[%c0_3, %c0_4] : memref<1x32xf32, #tpu.memory_space<vmem>>, vector<1x32xf32>
    %c0_5 = arith.constant 0 : index
    %c0_6 = arith.constant 0 : index
    %4 = vector.load %arg4[%c0_5, %c0_6] : memref<1x32xf32, #tpu.memory_space<vmem>>, vector<1x32xf32>
    %cst = arith.constant dense<0.000000e+00> : vector<16xf32>
    %5 = vector.multi_reduction <add>, %2, %cst [1] : vector<16x32xf32> to vector<16xf32>
    %6 = vector.shape_cast %5 : vector<16xf32> to vector<16x1xf32>
    %cst_7 = arith.constant 3.200000e+01 : f32
    %7 = vector.broadcast %cst_7 : f32 to vector<16x1xf32>
    %8 = arith.divf %6, %7 : vector<16x1xf32>
    %9 = vector.broadcast %8 : vector<16x1xf32> to vector<16x32xf32>
    %10 = arith.subf %2, %9 : vector<16x32xf32>
    %11 = arith.mulf %10, %10 : vector<16x32xf32>
    %cst_8 = arith.constant dense<0.000000e+00> : vector<16xf32>
    %12 = vector.multi_reduction <add>, %11, %cst_8 [1] : vector<16x32xf32> to vector<16xf32>
    %13 = vector.shape_cast %12 : vector<16xf32> to vector<16x1xf32>
    %cst_9 = arith.constant 3.100000e+01 : f32
    %14 = vector.broadcast %cst_9 : f32 to vector<16x1xf32>
    %15 = arith.divf %13, %14 : vector<16x1xf32>
    %16 = math.sqrt %15 : vector<16x1xf32>
    %17 = vector.broadcast %3 : vector<1x32xf32> to vector<16x32xf32>
    %18 = arith.mulf %17, %10 : vector<16x32xf32>
    %cst_10 = arith.constant 9.99999997E-7 : f32
    %19 = vector.broadcast %cst_10 : f32 to vector<16x1xf32>
    %20 = arith.addf %16, %19 : vector<16x1xf32>
    %21 = vector.broadcast %20 : vector<16x1xf32> to vector<16x32xf32>
    %22 = arith.divf %18, %21 : vector<16x32xf32>
    %23 = vector.broadcast %4 : vector<1x32xf32> to vector<16x32xf32>
    %24 = arith.addf %22, %23 : vector<16x32xf32>
    %c0_11 = arith.constant 0 : index
    %c0_12 = arith.constant 0 : index
    %25 = vector.load %arg5[%c0_11, %c0_12] : memref<16x32xf32, #tpu.memory_space<vmem>>, vector<16x32xf32>
    tpu.vector_store %arg5[%c0_11, %c0_12], %24 {strides = array<i32>} : memref<16x32xf32, #tpu.memory_space<vmem>>, vector<16x32xf32>,
    return
  }
  func.func @transform_0(%arg0: i32) -> (i32, i32) {
    %c0_i32 = arith.constant 0 : i32
    %c0_i32_0 = arith.constant 0 : i32
    return %arg0, %c0_i32 : i32, i32
  }
  func.func @transform_1(%arg0: i32) -> (i32, i32) {
    %c0_i32 = arith.constant 0 : i32
    %c0_i32_0 = arith.constant 0 : i32
    return %arg0, %c0_i32 : i32, i32
  }
  func.func @transform_2(%arg0: i32) -> (i32, i32) {
    %c0_i32 = arith.constant 0 : i32
    %c0_i32_0 = arith.constant 0 : i32
    %c0_i32_1 = arith.constant 0 : i32
    return %c0_i32, %c0_i32_0 : i32, i32
  }
  func.func @transform_3(%arg0: i32) -> (i32, i32) {
    %c0_i32 = arith.constant 0 : i32
    %c0_i32_0 = arith.constant 0 : i32
    %c0_i32_1 = arith.constant 0 : i32
    return %c0_i32, %c0_i32_0 : i32, i32
  }
  func.func @transform_4(%arg0: i32) -> (i32, i32) {
    %c0_i32 = arith.constant 0 : i32
    %c0_i32_0 = arith.constant 0 : i32
    return %arg0, %c0_i32 : i32, i32
  }
}

module attributes {stable_mosaic.version = 11 : i64} {
  func.func @_ffn_kernel(%arg0: i32, %arg1: memref<16x32xf32, #tpu.memory_space<vmem>>, %arg2: memref<32x64xf32, #tpu.memory_space<vmem>>, %arg3: memref<1x64xf32, #tpu.memory_space<vmem>>, %arg4: memref<64x32xf32, #tpu.memory_space<vmem>>, %arg5: memref<1x32xf32, #tpu.memory_space<vmem>>, %arg6: memref<16x32xf32, #tpu.memory_space<vmem>>) attributes {dimension_semantics = [#tpu.dimension_semantics<parallel>], iteration_bounds = array<i64: 1>, scalar_prefetch = 0 : i64, scratch_operands = 0 : i64, tpu.core_type = #tpu.core_type<tc>, window_params = [{transform_indices = @transform_0, window_bounds = array<i64: 16, 32>}, {pipeline_mode = #tpu.pipeline_mode<synchronous>, transform_indices = @transform_1, window_bounds = array<i64: 32, 64>}, {pipeline_mode = #tpu.pipeline_mode<synchronous>, transform_indices = @transform_2, window_bounds = array<i64: 1, 64>}, {pipeline_mode = #tpu.pipeline_mode<synchronous>, transform_indices = @transform_3, window_bounds = array<i64: 64, 32>}, {pipeline_mode = #tpu.pipeline_mode<synchronous>, transform_indices = @transform_4, window_bounds = array<i64: 1, 32>}, {transform_indices = @transform_5, window_bounds = array<i64: 16, 32>}]} {
    %c0 = arith.constant 0 : index
    %c0_0 = arith.constant 0 : index
    %0 = vector.load %arg1[%c0, %c0_0] : memref<16x32xf32, #tpu.memory_space<vmem>>, vector<16x32xf32>
    %1 = arith.truncf %0 : vector<16x32xf32> to vector<16x32xbf16>
    %c0_1 = arith.constant 0 : index
    %c0_2 = arith.constant 0 : index
    %2 = vector.load %arg2[%c0_1, %c0_2] : memref<32x64xf32, #tpu.memory_space<vmem>>, vector<32x64xf32>
    %3 = arith.truncf %2 : vector<32x64xf32> to vector<32x64xbf16>
    %cst = arith.constant dense<0.000000e+00> : vector<16x64xf32>
    %4 = tpu.matmul %1, %3, %cst {dimension_numbers = #tpu.dot_dimension_numbers<[1], [0], [0], [1], [0, 0, 1, 1], [], []>} : vector<16x32xbf16>, vector<32x64xbf16>, vector<16x64xf32> -> vector<16x64xf32>
    %c0_3 = arith.constant 0 : index
    %c0_4 = arith.constant 0 : index
    %5 = vector.load %arg3[%c0_3, %c0_4] : memref<1x64xf32, #tpu.memory_space<vmem>>, vector<1x64xf32>
    %6 = vector.broadcast %5 : vector<1x64xf32> to vector<16x64xf32>
    %7 = arith.addf %4, %6 : vector<16x64xf32>
    %cst_5 = arith.constant 0.000000e+00 : f32
    %8 = vector.broadcast %cst_5 : f32 to vector<16x64xf32>
    %9 = arith.maximumf %7, %8 : vector<16x64xf32>
    %10 = arith.truncf %9 : vector<16x64xf32> to vector<16x64xbf16>
    %c0_6 = arith.constant 0 : index
    %c0_7 = arith.constant 0 : index
    %11 = vector.load %arg4[%c0_6, %c0_7] : memref<64x32xf32, #tpu.memory_space<vmem>>, vector<64x32xf32>
    %12 = arith.truncf %11 : vector<64x32xf32> to vector<64x32xbf16>
    %cst_8 = arith.constant dense<0.000000e+00> : vector<16x32xf32>
    %13 = tpu.matmul %10, %12, %cst_8 {dimension_numbers = #tpu.dot_dimension_numbers<[1], [0], [0], [1], [0, 0, 1, 1], [], []>} : vector<16x64xbf16>, vector<64x32xbf16>, vector<16x32xf32> -> vector<16x32xf32>
    %c0_9 = arith.constant 0 : index
    %c0_10 = arith.constant 0 : index
    %14 = vector.load %arg5[%c0_9, %c0_10] : memref<1x32xf32, #tpu.memory_space<vmem>>, vector<1x32xf32>
    %15 = vector.broadcast %14 : vector<1x32xf32> to vector<16x32xf32>
    %16 = arith.addf %13, %15 : vector<16x32xf32>
    %c0_11 = arith.constant 0 : index
    %c0_12 = arith.constant 0 : index
    %17 = vector.load %arg6[%c0_11, %c0_12] : memref<16x32xf32, #tpu.memory_space<vmem>>, vector<16x32xf32>
    tpu.vector_store %arg6[%c0_11, %c0_12], %16 {strides = array<i32>} : memref<16x32xf32, #tpu.memory_space<vmem>>, vector<16x32xf32>,
    return
  }
  func.func @transform_0(%arg0: i32) -> (i32, i32) {
    %c0_i32 = arith.constant 0 : i32
    %c0_i32_0 = arith.constant 0 : i32
    return %arg0, %c0_i32 : i32, i32
  }
  func.func @transform_1(%arg0: i32) -> (i32, i32) {
    %c0_i32 = arith.constant 0 : i32
    %c0_i32_0 = arith.constant 0 : i32
    %c0_i32_1 = arith.constant 0 : i32
    return %c0_i32, %c0_i32_0 : i32, i32
  }
  func.func @transform_2(%arg0: i32) -> (i32, i32) {
    %c0_i32 = arith.constant 0 : i32
    %c0_i32_0 = arith.constant 0 : i32
    %c0_i32_1 = arith.constant 0 : i32
    return %c0_i32, %c0_i32_0 : i32, i32
  }
  func.func @transform_3(%arg0: i32) -> (i32, i32) {
    %c0_i32 = arith.constant 0 : i32
    %c0_i32_0 = arith.constant 0 : i32
    %c0_i32_1 = arith.constant 0 : i32
    return %c0_i32, %c0_i32_0 : i32, i32
  }
  func.func @transform_4(%arg0: i32) -> (i32, i32) {
    %c0_i32 = arith.constant 0 : i32
    %c0_i32_0 = arith.constant 0 : i32
    %c0_i32_1 = arith.constant 0 : i32
    return %c0_i32, %c0_i32_0 : i32, i32
  }
  func.func @transform_5(%arg0: i32) -> (i32, i32) {
    %c0_i32 = arith.constant 0 : i32
    %c0_i32_0 = arith.constant 0 : i32
    return %arg0, %c0_i32 : i32, i32
  }
}

module attributes {stable_mosaic.version = 11 : i64} {
  func.func @_ln_kernel(%arg0: i32, %arg1: memref<16x32xf32, #tpu.memory_space<vmem>>, %arg2: memref<1x32xf32, #tpu.memory_space<vmem>>, %arg3: memref<1x32xf32, #tpu.memory_space<vmem>>, %arg4: memref<16x32xf32, #tpu.memory_space<vmem>>) attributes {dimension_semantics = [#tpu.dimension_semantics<parallel>], iteration_bounds = array<i64: 1>, scalar_prefetch = 0 : i64, scratch_operands = 0 : i64, tpu.core_type = #tpu.core_type<tc>, window_params = [{transform_indices = @transform_0, window_bounds = array<i64: 16, 32>}, {pipeline_mode = #tpu.pipeline_mode<synchronous>, transform_indices = @transform_1, window_bounds = array<i64: 1, 32>}, {pipeline_mode = #tpu.pipeline_mode<synchronous>, transform_indices = @transform_2, window_bounds = array<i64: 1, 32>}, {transform_indices = @transform_3, window_bounds = array<i64: 16, 32>}]} {
    %c0 = arith.constant 0 : index
    %c0_0 = arith.constant 0 : index
    %0 = vector.load %arg1[%c0, %c0_0] : memref<16x32xf32, #tpu.memory_space<vmem>>, vector<16x32xf32>
    %c0_1 = arith.constant 0 : index
    %c0_2 = arith.constant 0 : index
    %1 = vector.load %arg2[%c0_1, %c0_2] : memref<1x32xf32, #tpu.memory_space<vmem>>, vector<1x32xf32>
    %c0_3 = arith.constant 0 : index
    %c0_4 = arith.constant 0 : index
    %2 = vector.load %arg3[%c0_3, %c0_4] : memref<1x32xf32, #tpu.memory_space<vmem>>, vector<1x32xf32>
    %cst = arith.constant dense<0.000000e+00> : vector<16xf32>
    %3 = vector.multi_reduction <add>, %0, %cst [1] : vector<16x32xf32> to vector<16xf32>
    %4 = vector.shape_cast %3 : vector<16xf32> to vector<16x1xf32>
    %cst_5 = arith.constant 3.200000e+01 : f32
    %5 = vector.broadcast %cst_5 : f32 to vector<16x1xf32>
    %6 = arith.divf %4, %5 : vector<16x1xf32>
    %7 = vector.broadcast %6 : vector<16x1xf32> to vector<16x32xf32>
    %8 = arith.subf %0, %7 : vector<16x32xf32>
    %9 = arith.mulf %8, %8 : vector<16x32xf32>
    %cst_6 = arith.constant dense<0.000000e+00> : vector<16xf32>
    %10 = vector.multi_reduction <add>, %9, %cst_6 [1] : vector<16x32xf32> to vector<16xf32>
    %11 = vector.shape_cast %10 : vector<16xf32> to vector<16x1xf32>
    %cst_7 = arith.constant 3.100000e+01 : f32
    %12 = vector.broadcast %cst_7 : f32 to vector<16x1xf32>
    %13 = arith.divf %11, %12 : vector<16x1xf32>
    %14 = math.sqrt %13 : vector<16x1xf32>
    %15 = vector.broadcast %1 : vector<1x32xf32> to vector<16x32xf32>
    %16 = arith.mulf %15, %8 : vector<16x32xf32>
    %cst_8 = arith.constant 9.99999997E-7 : f32
    %17 = vector.broadcast %cst_8 : f32 to vector<16x1xf32>
    %18 = arith.addf %14, %17 : vector<16x1xf32>
    %19 = vector.broadcast %18 : vector<16x1xf32> to vector<16x32xf32>
    %20 = arith.divf %16, %19 : vector<16x32xf32>
    %21 = vector.broadcast %2 : vector<1x32xf32> to vector<16x32xf32>
    %22 = arith.addf %20, %21 : vector<16x32xf32>
    %c0_9 = arith.constant 0 : index
    %c0_10 = arith.constant 0 : index
    %23 = vector.load %arg4[%c0_9, %c0_10] : memref<16x32xf32, #tpu.memory_space<vmem>>, vector<16x32xf32>
    tpu.vector_store %arg4[%c0_9, %c0_10], %22 {strides = array<i32>} : memref<16x32xf32, #tpu.memory_space<vmem>>, vector<16x32xf32>,
    return
  }
  func.func @transform_0(%arg0: i32) -> (i32, i32) {
    %c0_i32 = arith.constant 0 : i32
    %c0_i32_0 = arith.constant 0 : i32
    return %arg0, %c0_i32 : i32, i32
  }
  func.func @transform_1(%arg0: i32) -> (i32, i32) {
    %c0_i32 = arith.constant 0 : i32
    %c0_i32_0 = arith.constant 0 : i32
    %c0_i32_1 = arith.constant 0 : i32
    return %c0_i32, %c0_i32_0 : i32, i32
  }
  func.func @transform_2(%arg0: i32) -> (i32, i32) {
    %c0_i32 = arith.constant 0 : i32
    %c0_i32_0 = arith.constant 0 : i32
    %c0_i32_1 = arith.constant 0 : i32
    return %c0_i32, %c0_i32_0 : i32, i32
  }
  func.func @transform_3(%arg0: i32) -> (i32, i32) {
    %c0_i32 = arith.constant 0 : i32
    %c0_i32_0 = arith.constant 0 : i32
    return %arg0, %c0_i32 : i32, i32
  }
}

</mosaic_0001>

<bundles_post_ra>
// kernel: encoder_forward.15
= control target key start
LH: loop header
LB: loop body
LE: loop exit
PB: predicated region body
PF: predicated region fallthrough
CT: control target
= control target key end

     0   :  { %v97_v0 = vmov 0.0   ;;  %vm98_vm0 = vmmov 0   ;;  %vm31_vm1 = vcmask 261120   ;;  %s146_s1 = inlined_call_operand.vmem [shape: f32[32,32], index: 1, kind: input, shape index: {}]   ;;  %s147_s0 = inlined_call_operand.vmem [shape: f32[16,32], index: 0, kind: input, shape index: {}]   ;;  %s148_s2 = inlined_call_operand.vmem [shape: f32[1,32], index: 2, kind: input, shape index: {}]   ;;  %s149_s3 = inlined_call_operand.vmem [shape: f32[16,32], index: 3, kind: output, shape index: {}]  }
   0x1   :  { %87 = vmatprep.subr.bf16.mxu0 %v97_v0  ;;  %v20_v1 = vld [vmem:[%s146_s1 + $0x10] sm:$0xff]  ;;  %v21_v2 = vld [vmem:[%s146_s1 + $0x18] sm:$0xff]  ;;  %v18_v3 = vld [vmem:[%s146_s1] sm:$0xff]  ;;  %91 = vmatprep.mubr.msk.bf16.mxu0 %vm98_vm0, %v97_v0 }
   0x2   :  { %v23_v4 = vpack.c.bf16 %v21_v2, %v20_v1  ;;  %v19_v5 = vld [vmem:[%s146_s1 + $0x8] sm:$0xff]  ;;  %v15_v7 = vld [vmem:[%s147_s0] sm:$0xff] }
   0x3   :  { %v22_v6 = vpack.c.bf16 %v19_v5, %v18_v3  ;;  %v16_v8 = vld [vmem:[%s147_s0 + $0x8] sm:$0xff]  ;;  %v82_v10 = vld [vmem:[%s148_s2] ss:$0 sm:$0xff] }
   0x4   :  { %88 = vmatpush3.bf16.msra.mxu0 %v23_v4  ;;  %v17_v9 = vpack.c.bf16 %v16_v8, %v15_v7 }
   0x5   :  { %89 = vmatprep.subr.bf16.mxu0 %v97_v0 }
   0x8   :  { %90 = vmatpush3.bf16.msra.mxu0 %v22_v6 }
   0xb   :  { %92 = vmatmul.mubr.msk.bf16.vlgmr.msra.gmra.mxu0 %vm31_vm1, %v17_v9 }
  0xcb   :  { %v69_v11 = vpop.f32.mrf.mxu0 }
  0xcc   :  { %v70_v12 = vadd.f32 %v82_v10, %v69_v11 }
  0xcd   :  { %v93_v13 = vpop.f32.mrf.mxu0 }
  0xce   :  { %76 = vst.msk [vmem:[%s149_s3] sm:$0xff] %vm31_vm1, %v70_v12 }
  0xcf   :  { %v72_v14 = vpop.f32.mrf.mxu0 }
  0xd0   :  { %v73_v15 = vadd.f32 %v82_v10, %v72_v14 }
  0xd1   :  { %v94_v16 = vpop.f32.mrf.mxu0 }
  0xd2   :  { %77 = vst.msk [vmem:[%s149_s3 + $0x8] sm:$0xff] %vm31_vm1, %v73_v15 }

// kernel: encoder_forward.13
= control target key start
LH: loop header
LB: loop body
LE: loop exit
PB: predicated region body
PF: predicated region fallthrough
CT: control target
= control target key end

     0   :  { %v98_v0 = vmov 0.0   ;;  %vm99_vm0 = vmmov 0   ;;  %vm31_vm1 = vcmask 261120   ;;  %vm76_vm2 = vcmask 785408   ;;  %s147_s1 = inlined_call_operand.vmem [shape: f32[32,96], index: 1, kind: input, shape index: {}]   ;;  %s148_s0 = inlined_call_operand.vmem [shape: f32[16,32], index: 0, kind: input, shape index: {}]   ;;  %s149_s2 = inlined_call_operand.vmem [shape: f32[1,96], index: 2, kind: input, shape index: {}]   ;;  %s150_s3 = inlined_call_operand.vmem [shape: f32[16,96], index: 3, kind: output, shape index: {}]  }
   0x1   :  { %88 = vmatprep.subr.bf16.mxu0 %v98_v0  ;;  %v20_v1 = vld [vmem:[%s147_s1 + $0x10] sm:$0xff]  ;;  %v21_v2 = vld [vmem:[%s147_s1 + $0x18] sm:$0xff]  ;;  %v18_v3 = vld [vmem:[%s147_s1] sm:$0xff]  ;;  %92 = vmatprep.mubr.msk.bf16.mxu0 %vm99_vm0, %v98_v0 }
   0x2   :  { %v23_v4 = vpack.c.bf16 %v21_v2, %v20_v1  ;;  %v19_v5 = vld [vmem:[%s147_s1 + $0x8] sm:$0xff]  ;;  %v15_v7 = vld [vmem:[%s148_s0] sm:$0xff] }
   0x3   :  { %v22_v6 = vpack.c.bf16 %v19_v5, %v18_v3  ;;  %v16_v8 = vld [vmem:[%s148_s0 + $0x8] sm:$0xff]  ;;  %v83_v10 = vld [vmem:[%s149_s2] ss:$0 sm:$0xff] }
   0x4   :  { %89 = vmatpush3.bf16.msra.mxu0 %v23_v4  ;;  %v17_v9 = vpack.c.bf16 %v16_v8, %v15_v7 }
   0x5   :  { %90 = vmatprep.subr.bf16.mxu0 %v98_v0 }
   0x8   :  { %91 = vmatpush3.bf16.msra.mxu0 %v22_v6 }
   0xb   :  { %93 = vmatmul.mubr.msk.bf16.vlgmr.msra.gmra.mxu0 %vm31_vm1, %v17_v9 }
  0xcb   :  { %v69_v11 = vpop.f32.mrf.mxu0 }
  0xcc   :  { %v70_v12 = vadd.f32 %v83_v10, %v69_v11 }
  0xcd   :  { %v94_v13 = vpop.f32.mrf.mxu0 }
  0xce   :  { %77 = vst.msk [vmem:[%s150_s3] sm:$0xff] %vm76_vm2, %v70_v12 }
  0xcf   :  { %v72_v14 = vpop.f32.mrf.mxu0 }
  0xd0   :  { %v73_v15 = vadd.f32 %v83_v10, %v72_v14 }
  0xd1   :  { %v95_v16 = vpop.f32.mrf.mxu0 }
  0xd2   :  { %78 = vst.msk [vmem:[%s150_s3 + $0x8] sm:$0xff] %vm76_vm2, %v73_v15 }

// kernel: encoder_forward.14
= control target key start
LH: loop header
LB: loop body
LE: loop exit
PB: predicated region body
PF: predicated region fallthrough
CT: control target
= control target key end

     0   :  { %s854_s9 = smov 0   ;;  %s954_s0 = inlined_call_operand.vmem [shape: f32[2,8,96], index: 0, kind: input, shape index: {}]   ;;  %s955_s1 = inlined_call_operand.vmem [shape: f32[2,1,8], index: 1, kind: input, shape index: {}]   ;;  %s956_s2 = inlined_call_operand.vmem [shape: f32[2,8,32], index: 2, kind: output, shape index: {}]  }
   0x1 LB: > { %s693_s10 = sadd.s32 4294967295, %s821_s9   ;;  %p697_p0 = scmp.ge.s32.totalorder %s821_s9, 1  ;;  %s821_s9 = sphi %s854_s9, %s12_s9  }
   0x2   : > { %p119_p1 = scmp.lt.s32.totalorder %s821_s9, 3 }
   0x4   : > { %p120_p2 = pnand %p697_p0, %p119_p1 }
   0x5   : > { %p142_p3 = scmp.lt.s32.totalorder (!%p120_p2), %s693_s10, 1  ;;  %s825_s15 = smov (!%p120_p2), 96  }
   0x6   : > { %123 = sbr.rel (%p120_p2) target bundleno = 1541 (0x605), region = 28  ;;  %s826_s16 = smov (!%p120_p2), 64  }
   0x7   : > { %s827_s17 = smov (!%p120_p2), 88   ;;  %s828_s21 = smov (!%p120_p2), 72  }
   0x8   : > { %s829_s22 = smov (!%p120_p2), 120   ;;  %s830_s23 = smov (!%p120_p2), 80  }
   0x9   : > { %s831_s24 = smov (!%p120_p2), 112   ;;  %s832_s25 = smov (!%p120_p2), 104  }
   0xa   : > { %s833_s26 = smov (!%p120_p2), 56   ;;  %s834_s27 = smov (!%p120_p2), 48  }
   0xb   : > { %v823_v0 = vmov 0.0   ;;  %vm824_vm0 = vmmov 0   ;;  %s958_s10 = smov (!%p142_p3, %s693_s10), 1  ;;  %vm160_vm1 = vcmask 64512   ;;  %vm232_vm2 = vcmask 1043456   ;;  %s835_s28 = smov 40  }
   0xc   : > { %727 = vmatprep.subr.bf16.mxu0 %v823_v0  ;;  %729 = vmatprep.mubr.msk.bf16.mxu0 %vm824_vm0, %v823_v0  ;;  %s698_s11 = sshll.u32 %s958_s10, 3  ;;  %s148_s20 = scalar_lea.vmem %s955_s1, %s958_s10  ;;  %vm625_vm3 = vcmask 130048   ;;  %vm627_vm4 = vcmask 195584   ;;  %vm629_vm5 = vcmask 261120  }
   0xd   : > { %733 = vmatprep.subr.bf16.mxu1 %v823_v0  ;;  %735 = vmatprep.mubr.msk.bf16.mxu1 %vm824_vm0, %v823_v0  ;;  %s145_s14 = scalar_lea.vmem %s954_s0, %s698_s11  ;;  %v891_v6 = vld [vmem:[%s148_s20] ss:$0 sm:$0xff]  ;;  %s836_s29 = smov 8  }
   0xe   : > { %v154_v1 = vld [vmem:[%s145_s14] sm:$0xff]  ;;  %s837_s30 = smov 16   ;;  %s838_s3 = smov 24  }
   0xf   : > { %v876_v2 = vpack.c.bf16 %v154_v1, %v154_v1  ;;  %s152_s6 = scalar_lea.vmem %s956_s2, %s698_s11 }
  0x11   : > { %158 = vrot.lane.b32.xlu0 %v876_v2, %s825_s15  ;;  %227 = vrot.lane.b32.xlu1 %v876_v2, %s826_s16 }
  0x15   : > { %278 = vrot.lane.b32.xlu1 %v876_v2, %s827_s17 }
  0x83   : > { %v159_v3 = vpop.permute.xlu0 %158  ;;  %v228_v13 = vpop.permute.xlu1 %227 }
  0x84   : > { %v165_v4 = vsel %vm160_vm1, %v159_v3, 0  ;;  %v234_v14 = vsel %vm232_vm2, %v228_v13, 0 }
  0x85   : > { %728 = vmatpush3.bf16.xpose.msra.mxu0 %v165_v4  ;;  %734 = vmatpush3.bf16.msra.mxu1 %v234_v14 }
  0x86   : > { %745 = vmatprep.subr.bf16.mxu0 %v823_v0  ;;  %739 = vmatprep.subr.bf16.mxu1 %v823_v0 }
  0x87   : > { %v279_v20 = vpop.permute.xlu1 %278 }
  0x88   : > { %v284_v26 = vsel %vm160_vm1, %v279_v20, 0 }
  0x8c   : > { %730 = vmatmul.mubr.msk.bf16.vlgmr.msra.gmra.mxu0 %vm160_vm1, %v876_v2 }
  0x8d   : > { %747 = vmatprep.mubr.msk.bf16.mxu0 %vm824_vm0, %v823_v0 }
 0x14c   : > { %v201_v5 = vpop.f32.mrf.mxu0 }
 0x14d   : > { %v207_v7 = vmul.f32 0.35355338, %v201_v5 }
 0x14e   : > { %v731_v8 = vpop.f32.mrf.mxu0 }
 0x14f   : > { %v214_v9 = vadd.f32 %v891_v6, %v207_v7 }
 0x150   : > { %v204_v10 = vpop.f32.mrf.mxu0 }
 0x151   : > { %v215_v11 = vsel %vm160_vm1, %v214_v9, -inf }
 0x152   : > { %216 = vmax.xlane.f32.xlu0 %v215_v11  ;;  %v732_v12 = vpop.f32.mrf.mxu0 }
 0x168   : > { %502 = vrot.lane.b32.xlu0 %v876_v2, %s828_s21 }
 0x1db   : > { %v217_v15 = vpop.xlane.xlu0 %216 }
 0x1dc   : > { %v218_v16 = vsub.f32 %v214_v9, %v217_v15 }
 0x1de   : > { %v219_v17 = vmul.f32 1.442695, %v218_v16 }
 0x1df   : > { %v503_v29 = vpop.permute.xlu0 %502 }
 0x1e0   : > { %799 = vpow2.f32 %v219_v17  ;;  %v508_v31 = vsel %vm160_vm1, %v503_v29, 0 }
 0x1ed   : > { %v800_v18 = vpop.eup %799 }
 0x1ee   : > { %v221_v19 = vsel %vm160_vm1, %v800_v18, 0.0 }
 0x1ef   : > { %222 = vadd.xlane.f32.xlu1 %v221_v19 }
 0x200   : > { %276 = vrot.lane.b32.xlu1 %v876_v2, %s829_s22 }
 0x204   : > { %390 = vrot.lane.b32.xlu1 %v876_v2, %s830_s23 }
 0x208   : > { %388 = vrot.lane.b32.xlu1 %v876_v2, %s831_s24 }
 0x20c   : > { %500 = vrot.lane.b32.xlu1 %v876_v2, %s832_s25 }
 0x278   : > { %v223_v21 = vpop.xlane.xlu1 %222 }
 0x279   : > { %801 = vrcp.f32 %v223_v21 }
 0x27c   : > { %v277_v24 = vpop.permute.xlu1 %276 }
 0x280   : > { %v391_v27 = vpop.permute.xlu1 %390 }
 0x281   : > { %v396_v28 = vsel %vm160_vm1, %v391_v27, 0 }
 0x284   : > { %v389_v30 = vpop.permute.xlu1 %388 }
 0x286   : > { %v802_v22 = vpop.eup %801 }
 0x287   : > { %v225_v23 = vmul.f32 %v802_v22, %v800_v18 }
 0x288   : > { %v501_v32 = vpop.permute.xlu1 %500 }
 0x289   : > { %v226_v25 = vpack.c.bf16 %v225_v23, %v225_v23 }
 0x28b   : > { %736 = vmatmul.mubr.msk.bf16.vlgmr.msra.gmra.mxu1 %vm160_vm1, %v226_v25 }
 0x28c   : > { %740 = vmatpush3.bf16.xpose.msra.mxu1 %v284_v26  ;;  %741 = vmatprep.mubr.msk.bf16.mxu1 %vm824_vm0, %v823_v0 }
 0x28d   : > { %751 = vmatprep.subr.bf16.mxu1 %v823_v0 }
 0x293   : > { %742 = vmatmul.mubr.msk.bf16.vlgmr.msra.gmra.mxu1 %vm160_vm1, %v277_v24 }
 0x294   : > { %752 = vmatpush3.bf16.xpose.msra.mxu1 %v396_v28  ;;  %753 = vmatprep.mubr.msk.bf16.mxu1 %vm824_vm0, %v823_v0 }
 0x295   : > { %763 = vmatprep.subr.bf16.mxu1 %v823_v0 }
 0x29b   : > { %754 = vmatmul.mubr.msk.bf16.vlgmr.msra.gmra.mxu1 %vm160_vm1, %v389_v30 }
 0x29c   : > { %764 = vmatpush3.bf16.xpose.msra.mxu1 %v508_v31  ;;  %765 = vmatprep.mubr.msk.bf16.mxu1 %vm824_vm0, %v823_v0 }
 0x2a3   : > { %766 = vmatmul.mubr.msk.bf16.vlgmr.msra.gmra.mxu1 %vm160_vm1, %v501_v32 }
 0x34b   : > { %v918_v33 = vpop.f32.mrf.mxu1 }
 0x34d   : > { %v737_v34 = vpop.f32.mrf.mxu1 }
 0x34f   : > { %v273_v35 = vpop.f32.mrf.mxu1 }
 0x351   : > { %v738_v36 = vpop.f32.mrf.mxu1 }
 0x353   : > { %v320_v37 = vpop.f32.mrf.mxu1 }
 0x354   : > { %v326_v38 = vmul.f32 0.35355338, %v320_v37 }
 0x355   : > { %v743_v39 = vpop.f32.mrf.mxu1 }
 0x356   : > { %v327_v40 = vadd.f32 %v891_v6, %v326_v38 }
 0x357   : > { %v323_v41 = vpop.f32.mrf.mxu1 }
 0x358   : > { %v328_v42 = vsel %vm160_vm1, %v327_v40, -inf }
 0x359   : > { %329 = vmax.xlane.f32.xlu1 %v328_v42  ;;  %v744_v43 = vpop.f32.mrf.mxu1 }
 0x35b   : > { %v432_v44 = vpop.f32.mrf.mxu1 }
 0x35c   : > { %v438_v45 = vmul.f32 0.35355338, %v432_v44 }
 0x35d   : > { %v755_v46 = vpop.f32.mrf.mxu1 }
 0x35e   : > { %v439_v47 = vadd.f32 %v891_v6, %v438_v45 }
 0x35f   : > { %v435_v48 = vpop.f32.mrf.mxu1 }
 0x360   : > { %v440_v49 = vsel %vm160_vm1, %v439_v47, -inf }
 0x361   : > { %441 = vmax.xlane.f32.xlu0 %v440_v49  ;;  %v756_v50 = vpop.f32.mrf.mxu1 }
 0x363   : > { %v544_v51 = vpop.f32.mrf.mxu1 }
 0x364   : > { %v550_v52 = vmul.f32 0.35355338, %v544_v51 }
 0x365   : > { %v767_v53 = vpop.f32.mrf.mxu1 }
 0x366   : > { %v551_v54 = vadd.f32 %v891_v6, %v550_v52 }
 0x367   : > { %v547_v55 = vpop.f32.mrf.mxu1 }
 0x368   : > { %v552_v56 = vsel %vm160_vm1, %v551_v54, -inf }
 0x369   : > { %553 = vmax.xlane.f32.xlu1 %v552_v56  ;;  %v768_v57 = vpop.f32.mrf.mxu1 }
 0x3e2   : > { %v330_v58 = vpop.xlane.xlu1 %329 }
 0x3e3   : > { %v331_v59 = vsub.f32 %v327_v40, %v330_v58 }
 0x3e5   : > { %v332_v60 = vmul.f32 1.442695, %v331_v59 }
 0x3e7   : > { %803 = vpow2.f32 %v332_v60 }
 0x3ea   : > { %v442_v6 = vpop.xlane.xlu0 %441 }
 0x3eb   : > { %v443_v7 = vsub.f32 %v439_v47, %v442_v6 }
 0x3ed   : > { %v444_v8 = vmul.f32 1.442695, %v443_v7 }
 0x3f2   : > { %v554_v61 = vpop.xlane.xlu1 %553 }
 0x3f3   : > { %v555_v62 = vsub.f32 %v551_v54, %v554_v61 }
 0x3f4   : > { %v804_v63 = vpop.eup %803 }
 0x3f5   : > { %v556_v1 = vmul.f32 1.442695, %v555_v62  ;;  %v334_v3 = vsel %vm160_vm1, %v804_v63, 0.0 }
 0x3f6   : > { %335 = vadd.xlane.f32.xlu1 %v334_v3 }
 0x3f7   : > { %805 = vpow2.f32 %v556_v1 }
 0x3f8   : > { %807 = vpow2.f32 %v444_v8 }
 0x404   : > { %v806_v4 = vpop.eup %805 }
 0x405   : > { %v558_v5 = vsel %vm160_vm1, %v806_v4, 0.0  ;;  %v808_v9 = vpop.eup %807 }
 0x406   : > { %559 = vadd.xlane.f32.xlu0 %v558_v5  ;;  %v446_v10 = vsel %vm160_vm1, %v808_v9, 0.0 }
 0x407   : > { %340 = vrot.lane.b32.xlu1 %v876_v2, %s833_s26 }
 0x41c   : > { %452 = vrot.lane.b32.xlu0 %v876_v2, %s834_s27 }
 0x42b   : > { %447 = vadd.xlane.f32.xlu1 %v446_v10 }
 0x43c   : > { %564 = vrot.lane.b32.xlu1 %v876_v2, %s835_s28 }
 0x47f   : > { %v336_v11 = vpop.xlane.xlu1 %335 }
 0x480   : > { %809 = vrcp.f32 %v336_v11 }
 0x483   : > { %v341_v12 = vpop.permute.xlu1 %340 }
 0x484   : > { %v346_v13 = vsel %vm232_vm2, %v341_v12, 0 }
 0x485   : > { %746 = vmatpush3.bf16.msra.mxu0 %v346_v13 }
 0x486   : > { %757 = vmatprep.subr.bf16.mxu0 %v823_v0 }
 0x48d   : > { %v810_v14 = vpop.eup %809 }
 0x48e   : > { %v338_v15 = vmul.f32 %v810_v14, %v804_v63 }
 0x48f   : > { %v560_v16 = vpop.xlane.xlu0 %559 }
 0x490   : > { %v339_v17 = vpack.c.bf16 %v338_v15, %v338_v15 }
 0x492   : > { %748 = vmatmul.mubr.msk.bf16.vlgmr.msra.gmra.mxu0 %vm160_vm1, %v339_v17 }
 0x493   : > { %v453_v18 = vpop.permute.xlu0 %452  ;;  %759 = vmatprep.mubr.msk.bf16.mxu0 %vm824_vm0, %v823_v0 }
 0x494   : > { %v458_v2 = vsel %vm232_vm2, %v453_v18, 0 }
 0x495   : > { %758 = vmatpush3.bf16.msra.mxu0 %v458_v2 }
 0x496   : > { %769 = vmatprep.subr.bf16.mxu0 %v823_v0 }
 0x4b4   : > { %v448_v19 = vpop.xlane.xlu1 %447 }
 0x4b5   : > { %811 = vrcp.f32 %v448_v19 }
 0x4b6   : > { %813 = vrcp.f32 %v560_v16 }
 0x4b8   : > { %v565_v21 = vpop.permute.xlu1 %564 }
 0x4b9   : > { %v570_v23 = vsel %vm232_vm2, %v565_v21, 0 }
 0x4c2   : > { %v812_v20 = vpop.eup %811 }
 0x4c3   : > { %v450_v22 = vmul.f32 %v812_v20, %v808_v9  ;;  %v814_v25 = vpop.eup %813 }
 0x4c4   : > { %v562_v26 = vmul.f32 %v814_v25, %v806_v4 }
 0x4c5   : > { %v451_v24 = vpack.c.bf16 %v450_v22, %v450_v22 }
 0x4c6   : > { %v563_v27 = vpack.c.bf16 %v562_v26, %v562_v26 }
 0x4c7   : > { %760 = vmatmul.mubr.msk.bf16.vlgmr.msra.gmra.mxu0 %vm160_vm1, %v451_v24 }
 0x4c8   : > { %770 = vmatpush3.bf16.msra.mxu0 %v570_v23  ;;  %771 = vmatprep.mubr.msk.bf16.mxu0 %vm824_vm0, %v823_v0 }
 0x4cf   : > { %772 = vmatmul.mubr.msk.bf16.vlgmr.msra.gmra.mxu0 %vm160_vm1, %v563_v27 }
 0x552   : > { %v382_v28 = vpop.f32.mrf.mxu0 }
 0x553   : > { %613 = vrot.lane.b32.xlu1 %v382_v28, %s836_s29 }
 0x554   : > { %v749_v29 = vpop.f32.mrf.mxu0 }
 0x556   : > { %v385_v30 = vpop.f32.mrf.mxu0 }
 0x558   : > { %v750_v31 = vpop.f32.mrf.mxu0 }
 0x587   : > { %v494_v32 = vpop.f32.mrf.mxu0 }
 0x588   : > { %617 = vrot.lane.b32.xlu0 %v494_v32, %s837_s30 }
 0x589   : > { %v761_v34 = vpop.f32.mrf.mxu0 }
 0x58b   : > { %v497_v35 = vpop.f32.mrf.mxu0 }
 0x58d   : > { %v762_v36 = vpop.f32.mrf.mxu0 }
 0x58f   : > { %v606_v37 = vpop.f32.mrf.mxu0 }
 0x590   : > { %621 = vrot.lane.b32.xlu1 %v606_v37, %s838_s3 }
 0x591   : > { %v773_v0 = vpop.f32.mrf.mxu0 }
 0x593   : > { %v609_v38 = vpop.f32.mrf.mxu0 }
 0x595   : > { %v774_v39 = vpop.f32.mrf.mxu0 }
 0x5c5   : > { %v614_v40 = vpop.permute.xlu1 %613 }
 0x5c6   : > { %v624_v42 = vsel %vm160_vm1, %v918_v33, %v614_v40 }
 0x5fa   : > { %v618_v41 = vpop.permute.xlu0 %617 }
 0x5fb   : > { %v626_v43 = vsel %vm625_vm3, %v624_v42, %v618_v41 }
 0x602   : > { %v622_v44 = vpop.permute.xlu1 %621 }
 0x603   : > { %v628_v45 = vsel %vm627_vm4, %v626_v43, %v622_v44 }
 0x604   : > { %630 = vst.msk [vmem:[%s152_s6] sm:$0xff] %vm629_vm5, %v628_v45 }
 0x605 PF: > { %s12_s9 = sadd.s32 1, %s821_s9  }
 0x606   : > { %p9_p4 = scmp.ge.s32.totalorder %s12_s9, 4  }
 0x608   :  { %11 = sbr.rel (!%p9_p4) target bundleno = 1 (0x1), region = 61 }

// kernel: encoder_forward.16
= control target key start
LH: loop header
LB: loop body
LE: loop exit
PB: predicated region body
PF: predicated region fallthrough
CT: control target
= control target key end

     0   :  { %vm25_vm0 = vcmask 261120   ;;  %s155_s0 = inlined_call_operand.vmem [shape: f32[16,32], index: 0, kind: input, shape index: {}]   ;;  %s156_s1 = inlined_call_operand.vmem [shape: f32[16,32], index: 1, kind: input, shape index: {}]   ;;  %s157_s2 = inlined_call_operand.vmem [shape: f32[1,32], index: 2, kind: input, shape index: {}]   ;;  %s158_s3 = inlined_call_operand.vmem [shape: f32[1,32], index: 3, kind: input, shape index: {}]   ;;  %s159_s4 = inlined_call_operand.vmem [shape: f32[16,32], index: 4, kind: output, shape index: {}]  }
   0x1   :  { %v17_v0 = vld [vmem:[%s155_s0] sm:$0xff]  ;;  %v18_v2 = vld [vmem:[%s155_s0 + $0x8] sm:$0xff] }
   0x2   :  { %v19_v1 = vld [vmem:[%s156_s1] sm:$0xff]  ;;  %v20_v4 = vld [vmem:[%s156_s1 + $0x8] sm:$0xff] }
   0x3   :  { %v21_v3 = vadd.f32 %v19_v1, %v17_v0  ;;  %v22_v5 = vadd.f32 %v20_v4, %v18_v2  ;;  %v90_v34 = vld [vmem:[%s157_s2] ss:$0 sm:$0xff] }
   0x4   :  { %v91_v37 = vld [vmem:[%s158_s3] ss:$0 sm:$0xff] }
   0x5   :  { %v26_v6 = vsel %vm25_vm0, %v21_v3, 0.0  ;;  %v29_v7 = vsel %vm25_vm0, %v22_v5, 0.0 }
   0x6   :  { %27 = vadd.xlane.f32.xlu0 %v26_v6 }
   0xa   :  { %30 = vadd.xlane.f32.xlu0 %v29_v7 }
  0x8f   :  { %v28_v8 = vpop.xlane.xlu0 %27 }
  0x90   :  { %v33_v9 = vmul.f32 0.03125, %v28_v8 }
  0x92   :  { %v35_v10 = vsub.f32 %v21_v3, %v33_v9 }
  0x93   :  { %v31_v11 = vpop.xlane.xlu0 %30 }
  0x94   :  { %v34_v12 = vmul.f32 0.03125, %v31_v11  ;;  %v37_v13 = vmul.f32 %v35_v10, %v35_v10  ;;  %v68_v35 = vmul.f32 %v90_v34, %v35_v10 }
  0x96   :  { %v36_v14 = vsub.f32 %v22_v5, %v34_v12  ;;  %v39_v15 = vsel %vm25_vm0, %v37_v13, 0.0 }
  0x97   :  { %40 = vadd.xlane.f32.xlu1 %v39_v15 }
  0x98   :  { %v38_v16 = vmul.f32 %v36_v14, %v36_v14  ;;  %v69_v39 = vmul.f32 %v90_v34, %v36_v14 }
  0x9a   :  { %v42_v17 = vsel %vm25_vm0, %v38_v16, 0.0 }
  0x9b   :  { %43 = vadd.xlane.f32.xlu1 %v42_v17 }
 0x120   :  { %v41_v18 = vpop.xlane.xlu1 %40 }
 0x121   :  { %v46_v19 = vmul.f32 0.032258064, %v41_v18 }
 0x123   :  { %92 = vrsqrt.f32 %v46_v19  ;;  %vm50_vm1 = vcmp.eq.f32.partialorder %v46_v19, inf  ;;  %v53_v24 = vand.u32 2147483648, %v46_v19  ;;  %vm52_vm2 = vcmp.eq.f32.partialorder %v46_v19, 0.0 }
 0x124   :  { %v44_v20 = vpop.xlane.xlu1 %43 }
 0x125   :  { %v47_v21 = vmul.f32 0.032258064, %v44_v20 }
 0x127   :  { %94 = vrsqrt.f32 %v47_v21  ;;  %vm57_vm3 = vcmp.eq.f32.partialorder %v47_v21, inf  ;;  %v60_v30 = vand.u32 2147483648, %v47_v21  ;;  %vm59_vm4 = vcmp.eq.f32.partialorder %v47_v21, 0.0 }
 0x130   :  { %v93_v22 = vpop.eup %92 }
 0x131   :  { %v49_v23 = vmul.f32 %v93_v22, %v46_v19 }
 0x133   :  { %v51_v25 = vsel %vm50_vm1, %v46_v19, %v49_v23 }
 0x134   :  { %v95_v26 = vpop.eup %94  ;;  %v54_v27 = vsel %vm52_vm2, %v53_v24, %v51_v25 }
 0x135   :  { %v70_v28 = vadd.f32 1e-06, %v54_v27  ;;  %v56_v29 = vmul.f32 %v95_v26, %v47_v21 }
 0x137   :  { %96 = vrcp.f32 %v70_v28  ;;  %v58_v31 = vsel %vm57_vm3, %v47_v21, %v56_v29 }
 0x138   :  { %v61_v32 = vsel %vm59_vm4, %v60_v30, %v58_v31 }
 0x139   :  { %v71_v33 = vadd.f32 1e-06, %v61_v32 }
 0x13b   :  { %98 = vrcp.f32 %v71_v33 }
 0x144   :  { %v97_v36 = vpop.eup %96 }
 0x145   :  { %v73_v38 = vmul.f32 %v97_v36, %v68_v35 }
 0x147   :  { %v82_v40 = vadd.f32 %v91_v37, %v73_v38 }
 0x148   :  { %v99_v41 = vpop.eup %98 }
 0x149   :  { %84 = vst.msk [vmem:[%s159_s4] sm:$0xff] %vm25_vm0, %v82_v40  ;;  %v75_v42 = vmul.f32 %v99_v41, %v69_v39 }
 0x14b   :  { %v83_v43 = vadd.f32 %v91_v37, %v75_v42 }
 0x14d   :  { %85 = vst.msk [vmem:[%s159_s4 + $0x8] sm:$0xff] %vm25_vm0, %v83_v43 }

// kernel: encoder_forward.17
= control target key start
LH: loop header
LB: loop body
LE: loop exit
PB: predicated region body
PF: predicated region fallthrough
CT: control target
= control target key end

     0   :  { %v189_v0 = vmov 0.0   ;;  %vm190_vm0 = vmmov 0   ;;  %vm37_vm1 = vcmask 261120   ;;  %vm104_vm2 = vcmask 523264   ;;  %s278_s1 = inlined_call_operand.vmem [shape: f32[32,64], index: 1, kind: input, shape index: {}]   ;;  %s279_s3 = inlined_call_operand.vmem [shape: f32[64,32], index: 3, kind: input, shape index: {}]   ;;  %s280_s0 = inlined_call_operand.vmem [shape: f32[16,32], index: 0, kind: input, shape index: {}]   ;;  %s281_s2 = inlined_call_operand.vmem [shape: f32[1,64], index: 2, kind: input, shape index: {}]   ;;  %s282_s4 = inlined_call_operand.vmem [shape: f32[1,32], index: 4, kind: input, shape index: {}]   ;;  %s283_s5 = inlined_call_operand.vmem [shape: f32[16,32], index: 5, kind: output, shape index: {}]  }
   0x1   :  { %167 = vmatprep.subr.bf16.mxu0 %v189_v0  ;;  %v26_v1 = vld [vmem:[%s278_s1 + $0x10] sm:$0xff]  ;;  %v27_v2 = vld [vmem:[%s278_s1 + $0x18] sm:$0xff]  ;;  %v24_v3 = vld [vmem:[%s278_s1] sm:$0xff]  ;;  %171 = vmatprep.mubr.msk.bf16.mxu0 %vm190_vm0, %v189_v0 }
   0x2   :  { %v29_v4 = vpack.c.bf16 %v27_v2, %v26_v1  ;;  %v25_v5 = vld [vmem:[%s278_s1 + $0x8] sm:$0xff]  ;;  %175 = vmatprep.subr.bf16.mxu1 %v189_v0  ;;  %183 = vmatprep.mubr.msk.bf16.mxu1 %vm190_vm0, %v189_v0  ;;  %v91_v6 = vld [vmem:[%s279_s3 + $0x30] sm:$0xff]  ;;  %v92_v7 = vld [vmem:[%s279_s3 + $0x38] sm:$0xff] }
   0x3   :  { %v28_v8 = vpack.c.bf16 %v25_v5, %v24_v3  ;;  %v21_v9 = vld [vmem:[%s280_s0] sm:$0xff]  ;;  %v22_v10 = vld [vmem:[%s280_s0 + $0x8] sm:$0xff]  ;;  %v96_v11 = vpack.c.bf16 %v92_v7, %v91_v6  ;;  %v87_v16 = vld [vmem:[%s279_s3 + $0x10] sm:$0xff] }
   0x4   :  { %168 = vmatpush3.bf16.msra.mxu0 %v29_v4  ;;  %v23_v12 = vpack.c.bf16 %v22_v10, %v21_v9  ;;  %v89_v13 = vld [vmem:[%s279_s3 + $0x20] sm:$0xff]  ;;  %v90_v14 = vld [vmem:[%s279_s3 + $0x28] sm:$0xff]  ;;  %v88_v17 = vld [vmem:[%s279_s3 + $0x18] sm:$0xff] }
   0x5   :  { %169 = vmatprep.subr.bf16.mxu0 %v189_v0  ;;  %176 = vmatpush3.bf16.msra.mxu1 %v96_v11  ;;  %v95_v15 = vpack.c.bf16 %v90_v14, %v89_v13  ;;  %v94_v18 = vpack.c.bf16 %v88_v17, %v87_v16  ;;  %v85_v19 = vld [vmem:[%s279_s3] sm:$0xff]  ;;  %v86_v20 = vld [vmem:[%s279_s3 + $0x8] sm:$0xff] }
   0x6   :  { %177 = vmatprep.subr.bf16.mxu1 %v189_v0  ;;  %v93_v21 = vpack.c.bf16 %v86_v20, %v85_v19  ;;  %v155_v22 = vld [vmem:[%s281_s2] ss:$0 sm:$0xff] }
   0x7   :  { %v157_v32 = vld [vmem:[%s282_s4] ss:$0 sm:$0xff] }
   0x8   :  { %170 = vmatpush3.bf16.msra.mxu0 %v28_v8 }
   0x9   :  { %178 = vmatpush3.bf16.msra.mxu1 %v95_v15 }
   0xa   :  { %179 = vmatprep.subr.bf16.mxu1 %v189_v0 }
   0xb   :  { %172 = vmatmul.mubr.msk.bf16.vlgmr.msra.gmra.mxu0 %vm37_vm1, %v23_v12 }
   0xd   :  { %180 = vmatpush3.bf16.msra.mxu1 %v94_v18 }
   0xe   :  { %181 = vmatprep.subr.bf16.mxu1 %v189_v0 }
  0x11   :  { %182 = vmatpush3.bf16.msra.mxu1 %v93_v21 }
  0xcb   :  { %v75_v23 = vpop.f32.mrf.mxu0 }
  0xcc   :  { %v76_v25 = vadd.f32 %v155_v22, %v75_v23 }
  0xcd   :  { %v173_v24 = vpop.f32.mrf.mxu0 }
  0xce   :  { %v82_v29 = vmax.f32 %v76_v25, 0.0 }
  0xcf   :  { %v78_v26 = vpop.f32.mrf.mxu0 }
  0xd0   :  { %v79_v27 = vadd.f32 %v155_v22, %v78_v26 }
  0xd1   :  { %v174_v28 = vpop.f32.mrf.mxu0 }
  0xd2   :  { %v83_v30 = vmax.f32 %v79_v27, 0.0 }
  0xd4   :  { %v84_v31 = vpack.c.bf16 %v83_v30, %v82_v29 }
  0xd6   :  { %184 = vmatmul.mubr.msk.bf16.vlgmr.msra.gmra.mxu1 %vm104_vm2, %v84_v31 }
 0x196   :  { %v142_v33 = vpop.f32.mrf.mxu1 }
 0x197   :  { %v143_v34 = vadd.f32 %v157_v32, %v142_v33 }
 0x198   :  { %v185_v35 = vpop.f32.mrf.mxu1 }
 0x199   :  { %149 = vst.msk [vmem:[%s283_s5] sm:$0xff] %vm37_vm1, %v143_v34 }
 0x19a   :  { %v145_v36 = vpop.f32.mrf.mxu1 }
 0x19b   :  { %v146_v37 = vadd.f32 %v157_v32, %v145_v36 }
 0x19c   :  { %v186_v38 = vpop.f32.mrf.mxu1 }
 0x19d   :  { %150 = vst.msk [vmem:[%s283_s5 + $0x8] sm:$0xff] %vm37_vm1, %v146_v37 }

// kernel: encoder_forward.25
= control target key start
LH: loop header
LB: loop body
LE: loop exit
PB: predicated region body
PF: predicated region fallthrough
CT: control target
= control target key end

     0   :  { %vm19_vm0 = vcmask 261120   ;;  %s175_s0 = inlined_call_operand.vmem [shape: f32[16,32], index: 0, kind: input, shape index: {}]   ;;  %s176_s1 = inlined_call_operand.vmem [shape: f32[1,32], index: 1, kind: input, shape index: {}]   ;;  %s177_s2 = inlined_call_operand.vmem [shape: f32[1,32], index: 2, kind: input, shape index: {}]   ;;  %s178_s3 = inlined_call_operand.hbm [shape: f32[16,32], index: 3, kind: output, shape index: {}]  }
   0x1   :  { %v15_v0 = vld [vmem:[%s175_s0] sm:$0xff]  ;;  %v16_v1 = vld [vmem:[%s175_s0 + $0x8] sm:$0xff] }
   0x2   :  { %v20_v2 = vsel %vm19_vm0, %v15_v0, 0.0 }
   0x3   :  { %8 = vsyncpa [#allocation3], 0  ;;  %21 = vadd.xlane.f32.xlu0 %v20_v2  ;;  %v23_v3 = vsel %vm19_vm0, %v16_v1, 0.0  ;;  %v96_v30 = vld [vmem:[%s176_s1] ss:$0 sm:$0xff]  ;;  %s131_s19 = smov [#allocation2]  }
   0x4   :  { %v97_v33 = vld [vmem:[%s177_s2] ss:$0 sm:$0xff]  ;;  %s85_s20 = sshll.u32 %s131_s19, 4  ;;  %s86_s20 = int_to_ptr.vmem [resolvable:$true] %s85_s20 }
   0x5   :  { %s109_s1 = scalar_lea.vmem %s86_s20, 256  ;;  %p114_p1 = scmp.lt.s32.totalorder %s86_s20, %s86_s20 }
   0x6   :  { %p110_p0 = scmp.ne.s32.totalorder %s86_s20, %s109_s1  ;;  %p115_p2 = scmp.lt.s32.totalorder %s109_s1, %s109_s1 }
   0x7   :  { %24 = vadd.xlane.f32.xlu0 %v23_v3 }
   0x8   :  { %p116_p3 = por %p115_p2, %p114_p1 }
   0xa   :  { %p117_p4 = pnand %p116_p3, %p110_p0 }
  0x8c   :  { %v22_v4 = vpop.xlane.xlu0 %21 }
  0x8d   :  { %v27_v5 = vmul.f32 0.03125, %v22_v4 }
  0x8f   :  { %v29_v6 = vsub.f32 %v15_v0, %v27_v5 }
  0x90   :  { %v25_v7 = vpop.xlane.xlu0 %24 }
  0x91   :  { %v28_v8 = vmul.f32 0.03125, %v25_v7  ;;  %v31_v9 = vmul.f32 %v29_v6, %v29_v6  ;;  %v62_v31 = vmul.f32 %v96_v30, %v29_v6 }
  0x93   :  { %v30_v10 = vsub.f32 %v16_v1, %v28_v8  ;;  %v33_v11 = vsel %vm19_vm0, %v31_v9, 0.0 }
  0x94   :  { %34 = vadd.xlane.f32.xlu1 %v33_v11 }
  0x95   :  { %v32_v12 = vmul.f32 %v30_v10, %v30_v10  ;;  %v63_v35 = vmul.f32 %v96_v30, %v30_v10 }
  0x97   :  { %v36_v13 = vsel %vm19_vm0, %v32_v12, 0.0 }
  0x98   :  { %37 = vadd.xlane.f32.xlu1 %v36_v13 }
 0x11d   :  { %v35_v14 = vpop.xlane.xlu1 %34 }
 0x11e   :  { %v40_v15 = vmul.f32 0.032258064, %v35_v14 }
 0x120   :  { %101 = vrsqrt.f32 %v40_v15  ;;  %vm44_vm1 = vcmp.eq.f32.partialorder %v40_v15, inf  ;;  %v47_v20 = vand.u32 2147483648, %v40_v15  ;;  %vm46_vm2 = vcmp.eq.f32.partialorder %v40_v15, 0.0 }
 0x121   :  { %v38_v16 = vpop.xlane.xlu1 %37 }
 0x122   :  { %v41_v17 = vmul.f32 0.032258064, %v38_v16 }
 0x124   :  { %103 = vrsqrt.f32 %v41_v17  ;;  %vm51_vm3 = vcmp.eq.f32.partialorder %v41_v17, inf  ;;  %v54_v26 = vand.u32 2147483648, %v41_v17  ;;  %vm53_vm4 = vcmp.eq.f32.partialorder %v41_v17, 0.0 }
 0x12d   :  { %v102_v18 = vpop.eup %101 }
 0x12e   :  { %v43_v19 = vmul.f32 %v102_v18, %v40_v15 }
 0x130   :  { %v45_v21 = vsel %vm44_vm1, %v40_v15, %v43_v19 }
 0x131   :  { %v104_v22 = vpop.eup %103  ;;  %v48_v23 = vsel %vm46_vm2, %v47_v20, %v45_v21 }
 0x132   :  { %v64_v24 = vadd.f32 1e-06, %v48_v23  ;;  %v50_v25 = vmul.f32 %v104_v22, %v41_v17 }
 0x134   :  { %105 = vrcp.f32 %v64_v24  ;;  %v52_v27 = vsel %vm51_vm3, %v41_v17, %v50_v25 }
 0x135   :  { %v55_v28 = vsel %vm53_vm4, %v54_v26, %v52_v27 }
 0x136   :  { %v65_v29 = vadd.f32 1e-06, %v55_v28 }
 0x138   :  { %107 = vrcp.f32 %v65_v29 }
 0x141   :  { %v106_v32 = vpop.eup %105 }
 0x142   :  { %v67_v34 = vmul.f32 %v106_v32, %v62_v31 }
 0x144   :  { %v76_v36 = vadd.f32 %v97_v33, %v67_v34 }
 0x145   :  { %v108_v37 = vpop.eup %107 }
 0x146   :  { %v69_v38 = vmul.f32 %v108_v37, %v63_v35  ;;  %78 = vst.msk [vmem:[#allocation2] sm:$0xff] %vm19_vm0, %v76_v36 }
 0x148   :  { %v77_v39 = vadd.f32 %v97_v33, %v69_v38 }
 0x14a   :  { %79 = vst.msk [vmem:[#allocation2 + $0x8] sm:$0xff] %vm19_vm0, %v77_v39 }
 0x14b   :  { %120 = shalt.err (!%p117_p4)
}
 0x14c   :  { %s132_s2 = smov 128   ;;  %s133_s21 = smov 8  }
 0x14d   :  { %91 = dma.vmem_to_hbm [thread:$0]  %s86_s20, 256, %s178_s3, [#allocation3], %s132_s2, %s132_s2, %s133_s21  }
 0x14e   :  { %129 = dma.done.wait [#allocation3], 256  }
 0x14f   :  { %130 = vsyncadd [#allocation3], 4294967040 }
 0x150   :  { %95 = vsyncpa [#allocation3], 1 }

</bundles_post_ra>
